<compile_context>
chip_gen: v7x
topology: tpu7x:2x2x1
jax: 0.10.0
libtpu: 0.0.40
codegen_flags: <defaults>
</compile_context>

<pallas_src>
import functools

import jax
import jax.numpy as jnp
from jax.experimental import pallas as pl
from jax.experimental.pallas import tpu as pltpu


def _mcc_kernel(logits_ref, out_ref, acc_ref, *, temperature: float, batch_size: int):
    b = pl.program_id(0)
    nb = pl.num_programs(0)

    @pl.when(b == 0)
    def _init():
        acc_ref[...] = jnp.zeros_like(acc_ref)

    TB, C = logits_ref.shape
    inv_t = jnp.float32(1.0 / temperature)

    # ---- load tile, scale by 1/T, mask padded rows ----------------------
    z = logits_ref[...].astype(jnp.float32) * inv_t                     # [TB, C]
    row = b * TB + jax.lax.broadcasted_iota(jnp.int32, (TB, 1), 0)      # [TB, 1]
    valid = row < batch_size                                            # [TB, 1]
    z = jnp.where(valid, z, 0.0)          # padded rows -> uniform distribution

    # ---- softmax over classes (reciprocal-multiply, no broadcast divide) -
    z = z - jnp.max(z, axis=1, keepdims=True)
    e = jnp.exp(z)
    p = e * pl.reciprocal(jnp.sum(e, axis=1, keepdims=True), approx=False)  # [TB, C]

    # ---- entropy weight (per row; global B/sum(w) factor cancels later) --
    H = -jnp.sum(p * jnp.log(p + jnp.float32(1e-5)), axis=1, keepdims=True)  # [TB, 1]
    w = 1.0 + jnp.exp(-H)                                                    # [TB, 1]
    wp = p * jnp.where(valid, w, 0.0)       # masked rows contribute nothing

    # ---- accumulate class-confusion matrix: acc += wp^T @ p (contract batch)
    acc_ref[...] += jax.lax.dot_general(
        wp, p,
        dimension_numbers=(((0,), (0,)), ((), ())),
        preferred_element_type=jnp.float32,
    )

    # ---- epilogue: O(C) normalize + trace using symmetry ------------------
    @pl.when(b == nb - 1)
    def _finalize():
        ccm = acc_ref[...]                                     # [C, C], symmetric
        rowsum = jnp.sum(ccm, axis=1, keepdims=True)           # [C, 1]
        inv_rowsum = pl.reciprocal(rowsum, approx=False)       # [C, 1]
        ri = jax.lax.broadcasted_iota(jnp.int32, (C, C), 0)
        ci = jax.lax.broadcasted_iota(jnp.int32, (C, C), 1)
        # trace of the normalized matrix; sum of the normalized matrix == C.
        diag_term = jnp.sum(jnp.where(ri == ci, ccm * inv_rowsum, 0.0))
        out_ref[0, 0] = (jnp.float32(C) - diag_term) / jnp.float32(C)


def mcc_loss_pallas(logits: jax.Array, temperature: float, *, block_b: int | None = None) -> jax.Array:
    """Minimum Class Confusion loss computed in a batch-tiled Pallas TPU kernel."""
    B, C = logits.shape
    itemsize = jnp.dtype(logits.dtype).itemsize

    if block_b is None:
        # MXU-friendly contraction depth, capped so a double-buffered (TB, C)
        # input block stays well under scoped VMEM on every generation
        # (including v7x's smaller budget).
        rows_budget = max(8, (4 * 1024 * 1024) // max(1, C * itemsize))
        block_b = min(512, rows_budget)

    if block_b >= B:
        block_b = B                               # full-extent block: always legal
    else:
        block_b = max(8, (block_b // 8) * 8)      # sublane-aligned tiles

    nb = pl.cdiv(B, block_b)

    kernel = functools.partial(
        _mcc_kernel, temperature=float(temperature), batch_size=B)

    cost = pl.CostEstimate(
        flops=2 * B * C * C + 12 * B * C,      # matmul + elementwise softmax/entropy
        transcendentals=3 * B * C,             # exp + log (+ exp(-H))
        bytes_accessed=B * C * itemsize + 4,
    )

    out = pl.pallas_call(
        kernel,
        out_shape=jax.ShapeDtypeStruct((1, 1), jnp.float32),
        grid_spec=pltpu.PrefetchScalarGridSpec(
            num_scalar_prefetch=0,
            grid=(nb,),
            in_specs=[pl.BlockSpec((block_b, C), lambda b: (b, 0))],
            out_specs=pl.BlockSpec(memory_space=pltpu.SMEM),
            scratch_shapes=[pltpu.VMEM((C, C), jnp.float32)],
        ),
        compiler_params=pltpu.CompilerParams(
            dimension_semantics=("arbitrary",),   # batch axis is a reduction
        ),
        cost_estimate=cost,
    )(logits)
    return out[0, 0]


def mcc_loss_ref(logits: jax.Array, temperature: float) -> jax.Array:
    """Pure-JAX reference mirroring the PyTorch module exactly."""
    B, C = logits.shape
    p = jax.nn.softmax(logits.astype(jnp.float32) / temperature, axis=1)
    H = -jnp.sum(p * jnp.log(p + 1e-5), axis=1)
    w = 1.0 + jnp.exp(-H)
    w = (B * w / jnp.sum(w))[:, None]
    ccm = (p * w).T @ p
    ccm = ccm / jnp.sum(ccm, axis=1)          # PyTorch broadcast over last axis
    return (jnp.sum(ccm) - jnp.trace(ccm)) / C


if __name__ == "__main__":
    key = jax.random.PRNGKey(0)
    temperature = 2.0

    # 1) small module-consistent shape, single block
    k1, k2, k3 = jax.random.split(key, 3)
    logits1 = jax.random.normal(k1, (8, 32), dtype=jnp.float32)
    loss1 = jax.block_until_ready(mcc_loss_pallas(logits1, temperature))
    ref1 = mcc_loss_ref(logits1, temperature)
    assert jnp.allclose(loss1, ref1, atol=1e-4, rtol=1e-4), (loss1, ref1)

    # 2) batch-tiled path: grid of 3 full tiles (exercises the accumulator)
    logits2 = jax.random.normal(k2, (24, 32), dtype=jnp.float32)
    loss2 = jax.block_until_ready(mcc_loss_pallas(logits2, temperature, block_b=8))
    ref2 = mcc_loss_ref(logits2, temperature)
    assert jnp.allclose(loss2, ref2, atol=1e-4, rtol=1e-4), (loss2, ref2)

    # 3) ragged batch: last tile partially out-of-bounds (exercises masking)
    logits3 = jax.random.normal(k3, (20, 32), dtype=jnp.float32)
    loss3 = jax.block_until_ready(mcc_loss_pallas(logits3, temperature, block_b=8))
    ref3 = mcc_loss_ref(logits3, temperature)
    assert jnp.allclose(loss3, ref3, atol=1e-4, rtol=1e-4), (loss3, ref3)

    print("KERNEL_OK")
</pallas_src>

<mosaic_0001>
module attributes {stable_mosaic.version = 11 : i64} {
  func.func @_mcc_kernel(%arg0: i32, %arg1: memref<8x32xf32, #tpu.memory_space<vmem>>, %arg2: memref<1x1xf32, #tpu.memory_space<smem>>, %arg3: memref<32x32xf32, #tpu.memory_space<vmem>>) attributes {dimension_semantics = [#tpu.dimension_semantics<arbitrary>], iteration_bounds = array<i64: 1>, scalar_prefetch = 0 : i64, scratch_operands = 1 : i64, tpu.core_type = #tpu.core_type<tc>, window_params = [{transform_indices = @transform_0, window_bounds = array<i64: 8, 32>}, {transform_indices = @transform_1, window_bounds = array<i64: 1, 1>}]} {
    %c0_i32 = arith.constant 0 : i32
    %0 = arith.cmpi eq, %arg0, %c0_i32 : i32
    %1 = arith.extui %0 : i1 to i32
    %c0_i32_0 = arith.constant 0 : i32
    %2 = arith.cmpi ne, %1, %c0_i32_0 : i32
    scf.if %2 {
      %cst_19 = arith.constant 0.000000e+00 : f32
      %50 = vector.broadcast %cst_19 : f32 to vector<32x32xf32>
      %c0_20 = arith.constant 0 : index
      %c0_21 = arith.constant 0 : index
      %51 = vector.load %arg3[%c0_20, %c0_21] : memref<32x32xf32, #tpu.memory_space<vmem>>, vector<32x32xf32>
      tpu.vector_store %arg3[%c0_20, %c0_21], %50 {strides = array<i32>} : memref<32x32xf32, #tpu.memory_space<vmem>>, vector<32x32xf32>,
    } else {
    }
    %c0 = arith.constant 0 : index
    %c0_1 = arith.constant 0 : index
    %3 = vector.load %arg1[%c0, %c0_1] : memref<8x32xf32, #tpu.memory_space<vmem>>, vector<8x32xf32>
    %cst = arith.constant 5.000000e-01 : f32
    %4 = vector.broadcast %cst : f32 to vector<8x32xf32>
    %5 = arith.mulf %3, %4 : vector<8x32xf32>
    %c8_i32 = arith.constant 8 : i32
    %6 = arith.muli %arg0, %c8_i32 : i32
    %7 = tpu.iota {dimensions = array<i32: 0>} : vector<8x1xi32>
    %8 = vector.broadcast %6 : i32 to vector<8x1xi32>
    %9 = arith.addi %8, %7 : vector<8x1xi32>
    %c8_i32_2 = arith.constant 8 : i32
    %10 = vector.broadcast %c8_i32_2 : i32 to vector<8x1xi32>
    %11 = arith.cmpi slt, %9, %10 : vector<8x1xi32>
    %cst_3 = arith.constant 0.000000e+00 : f32
    %12 = vector.shape_cast %11 : vector<8x1xi1> to vector<8x1xi1>
    %13 = vector.broadcast %12 : vector<8x1xi1> to vector<8x32xi1>
    %14 = vector.broadcast %cst_3 : f32 to vector<8x32xf32>
    %15 = arith.select %13, %5, %14 : vector<8x32xi1>, vector<8x32xf32>
    %cst_4 = arith.constant dense<0xFF800000> : vector<8xf32>
    %16 = vector.multi_reduction <maximumf>, %15, %cst_4 [1] : vector<8x32xf32> to vector<8xf32>
    %17 = vector.shape_cast %16 : vector<8xf32> to vector<8x1xf32>
    %18 = vector.broadcast %17 : vector<8x1xf32> to vector<8x32xf32>
    %19 = arith.subf %15, %18 : vector<8x32xf32>
    %20 = math.exp %19 : vector<8x32xf32>
    %cst_5 = arith.constant dense<0.000000e+00> : vector<8xf32>
    %21 = vector.multi_reduction <add>, %20, %cst_5 [1] : vector<8x32xf32> to vector<8xf32>
    %22 = vector.shape_cast %21 : vector<8xf32> to vector<8x1xf32>
    %23 = tpu.reciprocal %22 : vector<8x1xf32> -> vector<8x1xf32>
    %24 = vector.broadcast %23 : vector<8x1xf32> to vector<8x32xf32>
    %25 = arith.mulf %20, %24 : vector<8x32xf32>
    %cst_6 = arith.constant 9.99999974E-6 : f32
    %26 = vector.broadcast %cst_6 : f32 to vector<8x32xf32>
    %27 = arith.addf %25, %26 : vector<8x32xf32>
    %28 = math.log %27 : vector<8x32xf32>
    %29 = arith.mulf %25, %28 : vector<8x32xf32>
    %cst_7 = arith.constant dense<0.000000e+00> : vector<8xf32>
    %30 = vector.multi_reduction <add>, %29, %cst_7 [1] : vector<8x32xf32> to vector<8xf32>
    %31 = vector.shape_cast %30 : vector<8xf32> to vector<8x1xf32>
    %cst_8 = arith.constant 0.000000e+00 : f32
    %32 = vector.broadcast %cst_8 : f32 to vector<8x1xf32>
    %33 = arith.subf %32, %31 : vector<8x1xf32>
    %cst_9 = arith.constant 0.000000e+00 : f32
    %34 = vector.broadcast %cst_9 : f32 to vector<8x1xf32>
    %35 = arith.subf %34, %33 : vector<8x1xf32>
    %36 = math.exp %35 : vector<8x1xf32>
    %cst_10 = arith.constant 1.000000e+00 : f32
    %37 = vector.broadcast %cst_10 : f32 to vector<8x1xf32>
    %38 = arith.addf %37, %36 : vector<8x1xf32>
    %cst_11 = arith.constant 0.000000e+00 : f32
    %39 = vector.broadcast %cst_11 : f32 to vector<8x1xf32>
    %40 = arith.select %11, %38, %39 : vector<8x1xi1>, vector<8x1xf32>
    %41 = vector.broadcast %40 : vector<8x1xf32> to vector<8x32xf32>
    %42 = arith.mulf %25, %41 : vector<8x32xf32>
    %c0_12 = arith.constant 0 : index
    %c0_13 = arith.constant 0 : index
    %43 = vector.load %arg3[%c0_12, %c0_13] : memref<32x32xf32, #tpu.memory_space<vmem>>, vector<32x32xf32>
    %cst_14 = arith.constant dense<0.000000e+00> : vector<32x32xf32>
    %44 = tpu.matmul %42, %25, %cst_14 {dimension_numbers = #tpu.dot_dimension_numbers<[0], [0], [1], [1], [0, 1, 1, 1], [], []>} : vector<8x32xf32>, vector<8x32xf32>, vector<32x32xf32> -> vector<32x32xf32>
    %45 = arith.addf %43, %44 : vector<32x32xf32>
    %c0_15 = arith.constant 0 : index
    %c0_16 = arith.constant 0 : index
    %46 = vector.load %arg3[%c0_15, %c0_16] : memref<32x32xf32, #tpu.memory_space<vmem>>, vector<32x32xf32>
    tpu.vector_store %arg3[%c0_15, %c0_16], %45 {strides = array<i32>} : memref<32x32xf32, #tpu.memory_space<vmem>>, vector<32x32xf32>,
    %c0_i32_17 = arith.constant 0 : i32
    %47 = arith.cmpi eq, %arg0, %c0_i32_17 : i32
    %48 = arith.extui %47 : i1 to i32
    %c0_i32_18 = arith.constant 0 : i32
    %49 = arith.cmpi ne, %48, %c0_i32_18 : i32
    scf.if %49 {
      %c0_19 = arith.constant 0 : index
      %c0_20 = arith.constant 0 : index
      %50 = vector.load %arg3[%c0_19, %c0_20] : memref<32x32xf32, #tpu.memory_space<vmem>>, vector<32x32xf32>
      %cst_21 = arith.constant dense<0.000000e+00> : vector<32xf32>
      %51 = vector.multi_reduction <add>, %50, %cst_21 [1] : vector<32x32xf32> to vector<32xf32>
      %52 = vector.shape_cast %51 : vector<32xf32> to vector<32x1xf32>
      %53 = tpu.reciprocal %52 : vector<32x1xf32> -> vector<32x1xf32>
      %54 = tpu.iota {dimensions = array<i32: 0>} : vector<32x32xi32>
      %55 = tpu.iota {dimensions = array<i32: 1>} : vector<32x32xi32>
      %56 = arith.cmpi eq, %54, %55 : vector<32x32xi32>
      %57 = vector.broadcast %53 : vector<32x1xf32> to vector<32x32xf32>
      %58 = arith.mulf %50, %57 : vector<32x32xf32>
      %cst_22 = arith.constant 0.000000e+00 : f32
      %59 = vector.broadcast %cst_22 : f32 to vector<32x32xf32>
      %60 = arith.select %56, %58, %59 : vector<32x32xi1>, vector<32x32xf32>
      %61 = vector.shape_cast %60 : vector<32x32xf32> to vector<1x32x32xf32>
      %cst_23 = arith.constant dense<0.000000e+00> : vector<1xf32>
      %62 = vector.multi_reduction <add>, %61, %cst_23 [1, 2] : vector<1x32x32xf32> to vector<1xf32>
      %63 = vector.shape_cast %62 : vector<1xf32> to vector<1x1x1xf32>
      %64 = vector.extract %63[0, 0, 0] : f32 from vector<1x1x1xf32>
      %cst_24 = arith.constant 3.200000e+01 : f32
      %65 = arith.subf %cst_24, %64 : f32
      %cst_25 = arith.constant 3.200000e+01 : f32
      %66 = arith.divf %65, %cst_25 : f32
      %c0_26 = arith.constant 0 : index
      %c0_27 = arith.constant 0 : index
      %67 = memref.load %arg2[%c0_26, %c0_27] : memref<1x1xf32, #tpu.memory_space<smem>>
      memref.store %66, %arg2[%c0_26, %c0_27] : memref<1x1xf32, #tpu.memory_space<smem>>
    } else {
    }
    return
  }
  func.func @transform_0(%arg0: i32) -> (i32, i32) {
    %c0_i32 = arith.constant 0 : i32
    %c0_i32_0 = arith.constant 0 : i32
    return %arg0, %c0_i32 : i32, i32
  }
  func.func @transform_1(%arg0: i32) -> (i32, i32) {
    %c0_i32 = arith.constant 0 : i32
    %c0_i32_0 = arith.constant 0 : i32
    %c0_i32_1 = arith.constant 0 : i32
    return %c0_i32, %c0_i32_0 : i32, i32
  }
}

</mosaic_0001>

<bundles_post_ra>
// kernel: tpu_custom_call.1
= control target key start
LH: loop header
LB: loop body
LE: loop exit
PB: predicated region body
PF: predicated region fallthrough
CT: control target
= control target key end

     0   :  { %6 = vsyncpa [#allocation4], 0  ;;  %s417_s0 = inlined_call_operand.hbm [shape: f32[8,32], index: 0, kind: input, shape index: {}]   ;;  %s418_s1 = inlined_call_operand.hbm [shape: f32[1,1], index: 1, kind: output, shape index: {}]  }
   0x1   :  { %7 = vsyncpa [#allocation5], 0  ;;  %s361_s6 = smov [#allocation3]   ;;  %s325_s10 = scalar_lea.hbm %s417_s0, 128 }
   0x2   :  { %s14_s7 = sshll.u32 %s361_s6, 4  ;;  %p326_p0 = scmp.ne.s32.totalorder %s417_s0, %s325_s10  ;;  %s15_s7 = int_to_ptr.vmem [resolvable:$true] %s14_s7 }
   0x3   :  { %p329_p1 = scmp.lt.u32.totalorder %s325_s10, %s417_s0 }
   0x5   :  { %p331_p2 = pnand %p329_p1, %p326_p0 }
   0x7   :  { %334 = shalt.err (!%p331_p2)
}
   0x8   :  { %s335_s15 = scalar_lea.vmem %s15_s7, 128  ;;  %p340_p4 = scmp.lt.s32.totalorder %s15_s7, %s15_s7 }
   0x9   :  { %p336_p3 = scmp.ne.s32.totalorder %s15_s7, %s335_s15  ;;  %p341_p5 = scmp.lt.s32.totalorder %s335_s15, %s335_s15 }
   0xb   :  { %p342_p6 = por %p341_p5, %p340_p4 }
   0xd   :  { %p343_p7 = pnand %p342_p6, %p336_p3 }
   0xf   :  { %346 = shalt.err (!%p343_p7)
}
  0x10   :  { %17 = dma.hbm_to_vmem [thread:$0]  %s417_s0, 128, %s15_s7, [#allocation4]  }
  0x11   :  { %357 = dma.done.wait [#allocation4], 128  }
  0x12   :  { %358 = vsyncadd [#allocation4], 4294967168  ;;  %vm25_vm0 = vcmask 261120   ;;  %v30_v0 = vld [vmem:[#allocation3] sm:$0xff]  ;;  %v362_v23 = vmov 0.0   ;;  %vm103_vm1 = vcmask 64512   ;;  %v33_v50 = vlaneseq }
  0x13   :  { %v31_v1 = vmul.f32 0.5, %v30_v0  ;;  %27 = vst.msk [vmem:[#allocation2 + $0x8] sm:$0xff] %vm25_vm0, %v362_v23  ;;  %26 = vst.msk [vmem:[#allocation2] sm:$0xff] %vm25_vm0, %v362_v23  ;;  %s347_s22 = scalar_lea.hbm %s418_s1, 16 }
  0x14   :  { %28 = vst.msk [vmem:[#allocation2 + $0x10] sm:$0xff] %vm25_vm0, %v362_v23  ;;  %29 = vst.msk [vmem:[#allocation2 + $0x18] sm:$0xff] %vm25_vm0, %v362_v23  ;;  %v34_v52 = vshrl.u32 %v33_v50, 7  ;;  %v236_v56 = vand.u32 127, %v33_v50  ;;  %p348_p8 = scmp.ne.s32.totalorder %s418_s1, %s347_s22  ;;  %p351_p9 = scmp.lt.u32.totalorder %s347_s22, %s418_s1 }
  0x15   :  { %v42_v2 = vsel %vm25_vm0, %v31_v1, -inf }
  0x16   :  { %43 = vmax.xlane.f32.xlu0 %v42_v2  ;;  %v232_v55 = vadd.s32 8, %v34_v52  ;;  %v233_v58 = vadd.s32 16, %v34_v52  ;;  %vm237_vm2 = vcmp.eq.s32.totalorder %v34_v52, %v236_v56  ;;  %v234_v63 = vadd.s32 24, %v34_v52  ;;  %p353_p10 = pnand %p351_p9, %p348_p8 }
  0x18   :  { %vm238_vm3 = vcmp.eq.s32.totalorder %v232_v55, %v236_v56  ;;  %vm239_vm4 = vcmp.eq.s32.totalorder %v233_v58, %v236_v56  ;;  %vm240_vm5 = vcmp.eq.s32.totalorder %v234_v63, %v236_v56 }
  0x1a   :  { %v68_v28 = vld [vmem:[#allocation2 + $0x8] sm:$0xff]  ;;  %v67_v29 = vld [vmem:[#allocation2] sm:$0xff] }
  0x1b   :  { %v70_v34 = vld [vmem:[#allocation2 + $0x18] sm:$0xff]  ;;  %v69_v35 = vld [vmem:[#allocation2 + $0x10] sm:$0xff] }
  0xa3   :  { %v44_v3 = vpop.xlane.xlu0 %43 }
  0xa4   :  { %v45_v4 = vsub.f32 %v31_v1, %v44_v3 }
  0xa6   :  { %v46_v5 = vmul.f32 1.442695, %v45_v4 }
  0xa8   :  { %309 = vpow2.f32 %v46_v5 }
  0xb2   :  { %v310_v6 = vpop.eup %309 }
  0xb3   :  { %v48_v7 = vsel %vm25_vm0, %v310_v6, 0.0 }
  0xb4   :  { %49 = vadd.xlane.f32.xlu0 %v48_v7 }
 0x141   :  { %v50_v8 = vpop.xlane.xlu0 %49 }
 0x142   :  { %311 = vrcp.f32 %v50_v8 }
 0x14c   :  { %v312_v9 = vpop.eup %311 }
 0x14d   :  { %v52_v10 = vmul.f32 %v312_v9, %v310_v6 }
 0x14f   :  { %294 = vmatprep.subr.mxu0 %v52_v10  ;;  %302 = vmatprep.subr.mxu1 %v52_v10  ;;  %v53_v11 = vadd.f32 1e-05, %v52_v10 }
 0x150   :  { %295 = vmatpush3.msra.mxu0 %v52_v10  ;;  %303 = vmatpush3.msra.mxu1 %v52_v10 }
 0x151   :  { %313 = vlog2.f32 %v53_v11 }
 0x15b   :  { %v314_v12 = vpop.eup %313 }
 0x15c   :  { %v55_v13 = vmul.f32 0.6931472, %v314_v12 }
 0x15e   :  { %v56_v14 = vmul.f32 %v55_v13, %v52_v10 }
 0x160   :  { %v57_v15 = vsel %vm25_vm0, %v56_v14, 0.0 }
 0x161   :  { %58 = vadd.xlane.f32.xlu1 %v57_v15 }
 0x1ee   :  { %v59_v16 = vpop.xlane.xlu1 %58 }
 0x1ef   :  { %v60_v17 = vsub.f32 0.0, %v59_v16 }
 0x1f1   :  { %v61_v18 = vsub.f32 0.0, %v60_v17 }
 0x1f3   :  { %v62_v19 = vmul.f32 1.442695, %v61_v18 }
 0x1f5   :  { %315 = vpow2.f32 %v62_v19 }
 0x1ff   :  { %v316_v20 = vpop.eup %315 }
 0x200   :  { %v64_v21 = vadd.f32 1.0, %v316_v20 }
 0x202   :  { %v66_v22 = vmul.f32 %v64_v21, %v52_v10 }
 0x204   :  { %71 = vxpose.xlu1.b32.start.end [1/1] (short) (narrow) %v66_v22, 32 }
 0x284   :  { %v87_v24 = vpop.trf.xlu1 }
 0x285   :  { %296 = vmatprep.mubr.msk.f32.mxu0 %vm103_vm1, %v87_v24 }
 0x288   :  { %v88_v25 = vpop.trf.xlu1 }
 0x289   :  { %297 = vmatmul.mubr.msk.f32.vlgmr.msra.gmra.mrb[0].mxu0 %vm103_vm1, %v88_v25 }
 0x28c   :  { %v89_v26 = vpop.trf.xlu1 }
 0x28d   :  { %299 = vmatprep.mubr.msk.f32.mxu1 %vm103_vm1, %v89_v26 }
 0x290   :  { %v90_v27 = vpop.trf.xlu1 }
 0x291   :  { %300 = vmatmul.mubr.msk.f32.vlgmr.msra.gmra.mrb[0].mxu1 %vm103_vm1, %v90_v27 }
 0x35c   :  { %v298_v30 = vpop.f32.mrb[0].mxu0 }
 0x35d   :  { %v202_v31 = vadd.f32 %v298_v30, %v68_v28  ;;  %v182_v32 = vpop.f32.mrb[1].mxu0 }
 0x35e   :  { %v201_v33 = vadd.f32 %v182_v32, %v67_v29 }
 0x35f   :  { %206 = vst.msk [vmem:[#allocation2 + $0x8] sm:$0xff] %vm25_vm0, %v202_v31 }
 0x360   :  { %205 = vst.msk [vmem:[#allocation2] sm:$0xff] %vm25_vm0, %v201_v33 }
 0x364   :  { %v301_v36 = vpop.f32.mrb[0].mxu1 }
 0x365   :  { %v204_v37 = vadd.f32 %v301_v36, %v70_v34  ;;  %v192_v38 = vpop.f32.mrb[1].mxu1 }
 0x366   :  { %v203_v39 = vadd.f32 %v192_v38, %v69_v35  ;;  %v213_v40 = vld [vmem:[#allocation2 + $0x8] sm:$0xff] }
 0x367   :  { %208 = vst.msk [vmem:[#allocation2 + $0x18] sm:$0xff] %vm25_vm0, %v204_v37  ;;  %v219_v41 = vsel %vm25_vm0, %v213_v40, 0.0  ;;  %v212_v42 = vld [vmem:[#allocation2] sm:$0xff] }
 0x368   :  { %207 = vst.msk [vmem:[#allocation2 + $0x10] sm:$0xff] %vm25_vm0, %v203_v39  ;;  %220 = vadd.xlane.f32.xlu0 %v219_v41  ;;  %v216_v43 = vsel %vm25_vm0, %v212_v42, 0.0 }
 0x36c   :  { %217 = vadd.xlane.f32.xlu0 %v216_v43 }
 0x36e   :  { %v215_v46 = vld [vmem:[#allocation2 + $0x18] sm:$0xff] }
 0x36f   :  { %v214_v44 = vld [vmem:[#allocation2 + $0x10] sm:$0xff]  ;;  %v225_v47 = vsel %vm25_vm0, %v215_v46, 0.0 }
 0x370   :  { %v222_v45 = vsel %vm25_vm0, %v214_v44, 0.0 }
 0x371   :  { %223 = vadd.xlane.f32.xlu0 %v222_v45 }
 0x375   :  { %226 = vadd.xlane.f32.xlu0 %v225_v47 }
 0x3f5   :  { %v221_v48 = vpop.xlane.xlu0 %220 }
 0x3f6   :  { %317 = vrcp.f32 %v221_v48 }
 0x3f9   :  { %v218_v49 = vpop.xlane.xlu0 %217 }
 0x3fa   :  { %319 = vrcp.f32 %v218_v49 }
 0x3fe   :  { %v224_v51 = vpop.xlane.xlu0 %223 }
 0x3ff   :  { %321 = vrcp.f32 %v224_v51 }
 0x400   :  { %v318_v54 = vpop.eup %317 }
 0x401   :  { %v242_v60 = vmul.f32 %v318_v54, %v213_v40 }
 0x402   :  { %v227_v53 = vpop.xlane.xlu0 %226 }
 0x403   :  { %323 = vrcp.f32 %v227_v53  ;;  %v246_v1 = vsel %vm238_vm3, %v242_v60, 0.0 }
 0x404   :  { %v320_v57 = vpop.eup %319  ;;  %v250_v5 = vsel %vm25_vm0, %v246_v1, 0.0 }
 0x405   :  { %v241_v59 = vmul.f32 %v320_v57, %v212_v42 }
 0x407   :  { %v245_v61 = vsel %vm237_vm2, %v241_v59, 0.0 }
 0x408   :  { %v249_v2 = vsel %vm25_vm0, %v245_v61, 0.0 }
 0x409   :  { %v322_v62 = vpop.eup %321  ;;  %v251_v8 = vadd.f32 %v250_v5, %v249_v2 }
 0x40a   :  { %v243_v0 = vmul.f32 %v322_v62, %v214_v44 }
 0x40c   :  { %v247_v3 = vsel %vm239_vm4, %v243_v0, 0.0 }
 0x40d   :  { %v324_v4 = vpop.eup %323  ;;  %v252_v6 = vsel %vm25_vm0, %v247_v3, 0.0 }
 0x40e   :  { %v244_v7 = vmul.f32 %v324_v4, %v215_v46  ;;  %v253_v10 = vadd.f32 %v252_v6, %v251_v8 }
 0x410   :  { %v248_v9 = vsel %vm240_vm5, %v244_v7, 0.0 }
 0x411   :  { %v254_v11 = vsel %vm25_vm0, %v248_v9, 0.0 }
 0x412   :  { %v255_v12 = vadd.f32 %v254_v11, %v253_v10 }
 0x414   :  { %256 = vadd.xlane.f32.xlu0 %v255_v12 }
 0x4a1   :  { %v257_v13 = vpop.xlane.xlu0 %256 }
 0x4a2   :  { %v258_v14 = vrot.slane %v257_v13, 4 }
 0x4a4   :  { %v259_v15 = vadd.f32 %v258_v14, %v257_v13 }
 0x4a6   :  { %v260_v16 = vrot.slane %v259_v15, 2 }
 0x4a8   :  { %v261_v17 = vadd.f32 %v260_v16, %v259_v15 }
 0x4aa   :  { %v262_v18 = vrot.slane %v261_v17, 1 }
 0x4ac   :  { %v263_v19 = vadd.f32 %v262_v18, %v261_v17 }
 0x4ae   :  { %304 = vpush %v263_v19 }
 0x4df   :  { %s305_s0 = spop %304 }
 0x4e0   :  { %s265_s18 = ssub.f32 32.0, %s305_s0 }
 0x4e2   :  { %s268_s19 = smul.f32 0.03125, %s265_s18 }
 0x4e4   :  { %270 = sst [smem:[#allocation6]] %s268_s19 }
 0x4e5   :  { %356 = shalt.err (!%p353_p10)
}
 0x4e6   :  { %s363_s27 = smov [#allocation6]  }
 0x4e7   :  { %278 = dma.smem_to_hbm %s363_s27, 16, %s418_s1, [#allocation5]  }
 0x4e8   :  { %359 = dma.done.wait [#allocation5], 16  }
 0x4e9   :  { %360 = vsyncadd [#allocation5], 4294967280 }
 0x4ea   :  { %282 = sfence }
 0x4eb   :  { %283 = vsyncpa [#allocation4], 1 }
 0x4ec   :  { %284 = vsyncpa [#allocation5], 1 }

</bundles_post_ra>
